<compile_context>
chip_gen: v7x
topology: tpu7x:2x2x1
jax: 0.10.0
libtpu: 0.0.40
codegen_flags: <defaults>
</compile_context>

<pallas_src>
import jax
import jax.numpy as jnp
from jax.experimental import pallas as pl
from jax.experimental.pallas import tpu as pltpu

# logical sizes from the PyTorch module
IN_F, H1, H2, OUT_F = 2, 10, 10, 1
H_PAD = 128          # hidden features padded to one lane width (weights only)
TILE_B_MAX = 4096    # batch rows per grid step


def _mlp_kernel(x_ref, w1_ref, b1_ref, w2_ref, b2_ref, w3_ref, b3_ref, o_ref):
    x = x_ref[...]                                           # (tile_b, 2) f32
    # fc1 on the VPU: h1 = x0*W1[0,:] + x1*W1[1,:] + b1  (K=2 -> skip the MXU)
    h1 = (x[:, 0:1] * w1_ref[0:1, :]
          + x[:, 1:2] * w1_ref[1:2, :]
          + b1_ref[...])
    h1 = jnp.maximum(h1, 0.0)                                # (tile_b, 128) f32
    # fc2 on the MXU in bf16 with f32 accumulation.
    h2 = jnp.dot(h1.astype(jnp.bfloat16), w2_ref[...],
                 preferred_element_type=jnp.float32)
    h2 = jnp.maximum(h2 + b2_ref[...], 0.0)                  # (tile_b, 128) f32
    # fc3 (out_features = 1) as a lane reduction (VPU mul + XLU reduce).
    out = jnp.sum(h2 * w3_ref[...], axis=-1, keepdims=True)  # (tile_b, 1)
    o_ref[...] = out + b3_ref[:, 0:1]


def _round_up(n, m):
    return ((n + m - 1) // m) * m


def _pad2(a, rows, cols):
    r, c = a.shape
    return jnp.pad(a, ((0, rows - r), (0, cols - c)))


def pad_params(params):
    """Pad/cast the weights ONCE (outside the forward; cache the result).

    Only weights are padded -- activations stay unpadded in HBM.
      w1: (2, 128)  f32     b1: (1, 128) f32
      w2: (128,128) bf16    b2: (1, 128) f32
      w3: (1, 128)  f32     b3: (1, 128) f32 (bias value in column 0)
    Zero padding keeps the math exact (padded lanes stay 0 through ReLU).
    """
    w1, b1, w2, b2, w3, b3 = params
    return (
        _pad2(w1, IN_F, H_PAD),
        _pad2(b1[None, :], 1, H_PAD),
        _pad2(w2, H_PAD, H_PAD).astype(jnp.bfloat16),
        _pad2(b2[None, :], 1, H_PAD),
        _pad2(w3.T, 1, H_PAD),              # (10,1) -> (1,10) -> (1,128)
        _pad2(b3[None, :], 1, H_PAD),
    )


def mlp_forward(x, padded_params):
    """x: (B, 2) float32 (unpadded). Returns (B, 1) float32."""
    w1_p, b1_p, w2_p, b2_p, w3_p, b3_p = padded_params
    B = x.shape[0]

    tile_b = min(TILE_B_MAX, _round_up(B, 8))
    grid = (pl.cdiv(B, tile_b),)
    const = lambda shape: pl.BlockSpec(shape, lambda i: (0, 0))

    return pl.pallas_call(
        _mlp_kernel,
        out_shape=jax.ShapeDtypeStruct((B, OUT_F), jnp.float32),
        grid=grid,
        in_specs=[
            pl.BlockSpec((tile_b, IN_F), lambda i: (i, 0)),   # x tile, unpadded
            const((IN_F, H_PAD)), const((1, H_PAD)),          # fc1 (resident)
            const((H_PAD, H_PAD)), const((1, H_PAD)),         # fc2 (resident)
            const((1, H_PAD)), const((1, H_PAD)),             # fc3 (resident)
        ],
        out_specs=pl.BlockSpec((tile_b, OUT_F), lambda i: (i, 0)),
        compiler_params=pltpu.CompilerParams(
            dimension_semantics=("parallel",),
            vmem_limit_bytes=32 * 1024 * 1024),
    )(x, w1_p, b1_p, w2_p, b2_p, w3_p, b3_p)


def init_params(key):
    """Deterministic init matching the PyTorch Linear shapes (stored transposed)."""
    ks = jax.random.split(key, 6)

    def linear(kw, kb, fan_in, fan_out):
        bound = 1.0 / jnp.sqrt(fan_in)
        w = jax.random.uniform(kw, (fan_in, fan_out), jnp.float32, -bound, bound)
        b = jax.random.uniform(kb, (fan_out,), jnp.float32, -bound, bound)
        return w, b

    w1, b1 = linear(ks[0], ks[1], IN_F, H1)
    w2, b2 = linear(ks[2], ks[3], H1, H2)
    w3, b3 = linear(ks[4], ks[5], H2, OUT_F)
    return (w1, b1, w2, b2, w3, b3)


def reference_forward(x, params):
    w1, b1, w2, b2, w3, b3 = params
    h = jnp.maximum(x @ w1 + b1, 0.0)
    h = jnp.maximum(h @ w2 + b2, 0.0)
    return h @ w3 + b3


if __name__ == "__main__":
    key = jax.random.PRNGKey(0)
    k_x, k_p = jax.random.split(key)
    x = jax.random.normal(k_x, (8, IN_F), jnp.float32)
    params = init_params(k_p)
    padded = pad_params(params)   # pad/cast once, reuse across forward calls

    y = jax.block_until_ready(mlp_forward(x, padded))
    y_ref = reference_forward(x, params)

    assert y.shape == (8, OUT_F)
    # fc2 runs with bf16 inputs (f32 accumulation), so compare against the f32
    # reference with a correspondingly relaxed tolerance.
    assert jnp.allclose(y, y_ref, atol=5e-2, rtol=5e-2)
    print("KERNEL_OK")
</pallas_src>

<mosaic_0001>
module attributes {stable_mosaic.version = 11 : i64} {
  func.func @_mlp_kernel(%arg0: i32, %arg1: memref<8x2xf32, #tpu.memory_space<vmem>>, %arg2: memref<2x128xf32, #tpu.memory_space<vmem>>, %arg3: memref<1x128xf32, #tpu.memory_space<vmem>>, %arg4: memref<128x128xbf16, #tpu.memory_space<vmem>>, %arg5: memref<1x128xf32, #tpu.memory_space<vmem>>, %arg6: memref<1x128xf32, #tpu.memory_space<vmem>>, %arg7: memref<1x128xf32, #tpu.memory_space<vmem>>, %arg8: memref<8x1xf32, #tpu.memory_space<vmem>>) attributes {dimension_semantics = [#tpu.dimension_semantics<parallel>], iteration_bounds = array<i64: 1>, scalar_prefetch = 0 : i64, scratch_operands = 0 : i64, tpu.core_type = #tpu.core_type<tc>, window_params = [{transform_indices = @transform_0, window_bounds = array<i64: 8, 2>}, {pipeline_mode = #tpu.pipeline_mode<synchronous>, transform_indices = @transform_1, window_bounds = array<i64: 2, 128>}, {pipeline_mode = #tpu.pipeline_mode<synchronous>, transform_indices = @transform_2, window_bounds = array<i64: 1, 128>}, {pipeline_mode = #tpu.pipeline_mode<synchronous>, transform_indices = @transform_3, window_bounds = array<i64: 128, 128>}, {pipeline_mode = #tpu.pipeline_mode<synchronous>, transform_indices = @transform_4, window_bounds = array<i64: 1, 128>}, {pipeline_mode = #tpu.pipeline_mode<synchronous>, transform_indices = @transform_5, window_bounds = array<i64: 1, 128>}, {pipeline_mode = #tpu.pipeline_mode<synchronous>, transform_indices = @transform_6, window_bounds = array<i64: 1, 128>}, {transform_indices = @transform_7, window_bounds = array<i64: 8, 1>}]} {
    %c0 = arith.constant 0 : index
    %c0_0 = arith.constant 0 : index
    %0 = vector.load %arg1[%c0, %c0_0] : memref<8x2xf32, #tpu.memory_space<vmem>>, vector<8x2xf32>
    %1 = vector.extract_strided_slice %0 {offsets = [0, 0], sizes = [8, 1], strides = [1, 1]} : vector<8x2xf32> to vector<8x1xf32>
    %c0_1 = arith.constant 0 : index
    %c0_2 = arith.constant 0 : index
    %2 = vector.load %arg2[%c0_1, %c0_2] : memref<2x128xf32, #tpu.memory_space<vmem>>, vector<1x128xf32>
    %3 = vector.broadcast %1 : vector<8x1xf32> to vector<8x128xf32>
    %4 = vector.broadcast %2 : vector<1x128xf32> to vector<8x128xf32>
    %5 = arith.mulf %3, %4 : vector<8x128xf32>
    %6 = vector.extract_strided_slice %0 {offsets = [0, 1], sizes = [8, 1], strides = [1, 1]} : vector<8x2xf32> to vector<8x1xf32>
    %c1 = arith.constant 1 : index
    %c0_3 = arith.constant 0 : index
    %7 = vector.load %arg2[%c1, %c0_3] : memref<2x128xf32, #tpu.memory_space<vmem>>, vector<1x128xf32>
    %8 = vector.broadcast %6 : vector<8x1xf32> to vector<8x128xf32>
    %9 = vector.broadcast %7 : vector<1x128xf32> to vector<8x128xf32>
    %10 = arith.mulf %8, %9 : vector<8x128xf32>
    %11 = arith.addf %5, %10 : vector<8x128xf32>
    %c0_4 = arith.constant 0 : index
    %c0_5 = arith.constant 0 : index
    %12 = vector.load %arg3[%c0_4, %c0_5] : memref<1x128xf32, #tpu.memory_space<vmem>>, vector<1x128xf32>
    %13 = vector.broadcast %12 : vector<1x128xf32> to vector<8x128xf32>
    %14 = arith.addf %11, %13 : vector<8x128xf32>
    %cst = arith.constant 0.000000e+00 : f32
    %15 = vector.broadcast %cst : f32 to vector<8x128xf32>
    %16 = arith.maximumf %14, %15 : vector<8x128xf32>
    %17 = arith.truncf %16 : vector<8x128xf32> to vector<8x128xbf16>
    %c0_6 = arith.constant 0 : index
    %c0_7 = arith.constant 0 : index
    %18 = vector.load %arg4[%c0_6, %c0_7] : memref<128x128xbf16, #tpu.memory_space<vmem>>, vector<128x128xbf16>
    %cst_8 = arith.constant dense<0.000000e+00> : vector<8x128xf32>
    %19 = tpu.matmul %17, %18, %cst_8 {dimension_numbers = #tpu.dot_dimension_numbers<[1], [0], [0], [1], [0, 0, 1, 1], [], []>} : vector<8x128xbf16>, vector<128x128xbf16>, vector<8x128xf32> -> vector<8x128xf32>
    %c0_9 = arith.constant 0 : index
    %c0_10 = arith.constant 0 : index
    %20 = vector.load %arg5[%c0_9, %c0_10] : memref<1x128xf32, #tpu.memory_space<vmem>>, vector<1x128xf32>
    %21 = vector.broadcast %20 : vector<1x128xf32> to vector<8x128xf32>
    %22 = arith.addf %19, %21 : vector<8x128xf32>
    %cst_11 = arith.constant 0.000000e+00 : f32
    %23 = vector.broadcast %cst_11 : f32 to vector<8x128xf32>
    %24 = arith.maximumf %22, %23 : vector<8x128xf32>
    %c0_12 = arith.constant 0 : index
    %c0_13 = arith.constant 0 : index
    %25 = vector.load %arg6[%c0_12, %c0_13] : memref<1x128xf32, #tpu.memory_space<vmem>>, vector<1x128xf32>
    %26 = vector.broadcast %25 : vector<1x128xf32> to vector<8x128xf32>
    %27 = arith.mulf %24, %26 : vector<8x128xf32>
    %cst_14 = arith.constant dense<0.000000e+00> : vector<8xf32>
    %28 = vector.multi_reduction <add>, %27, %cst_14 [1] : vector<8x128xf32> to vector<8xf32>
    %29 = vector.shape_cast %28 : vector<8xf32> to vector<8x1xf32>
    %c0_15 = arith.constant 0 : index
    %c0_16 = arith.constant 0 : index
    %30 = vector.load %arg7[%c0_15, %c0_16] : memref<1x128xf32, #tpu.memory_space<vmem>>, vector<1x1xf32>
    %31 = vector.broadcast %30 : vector<1x1xf32> to vector<8x1xf32>
    %32 = arith.addf %29, %31 : vector<8x1xf32>
    %c0_17 = arith.constant 0 : index
    %c0_18 = arith.constant 0 : index
    %33 = vector.load %arg8[%c0_17, %c0_18] : memref<8x1xf32, #tpu.memory_space<vmem>>, vector<8x1xf32>
    tpu.vector_store %arg8[%c0_17, %c0_18], %32 {strides = array<i32>} : memref<8x1xf32, #tpu.memory_space<vmem>>, vector<8x1xf32>,
    return
  }
  func.func @transform_0(%arg0: i32) -> (i32, i32) {
    %c0_i32 = arith.constant 0 : i32
    %c0_i32_0 = arith.constant 0 : i32
    return %arg0, %c0_i32 : i32, i32
  }
  func.func @transform_1(%arg0: i32) -> (i32, i32) {
    %c0_i32 = arith.constant 0 : i32
    %c0_i32_0 = arith.constant 0 : i32
    %c0_i32_1 = arith.constant 0 : i32
    return %c0_i32, %c0_i32_0 : i32, i32
  }
  func.func @transform_2(%arg0: i32) -> (i32, i32) {
    %c0_i32 = arith.constant 0 : i32
    %c0_i32_0 = arith.constant 0 : i32
    %c0_i32_1 = arith.constant 0 : i32
    return %c0_i32, %c0_i32_0 : i32, i32
  }
  func.func @transform_3(%arg0: i32) -> (i32, i32) {
    %c0_i32 = arith.constant 0 : i32
    %c0_i32_0 = arith.constant 0 : i32
    %c0_i32_1 = arith.constant 0 : i32
    return %c0_i32, %c0_i32_0 : i32, i32
  }
  func.func @transform_4(%arg0: i32) -> (i32, i32) {
    %c0_i32 = arith.constant 0 : i32
    %c0_i32_0 = arith.constant 0 : i32
    %c0_i32_1 = arith.constant 0 : i32
    return %c0_i32, %c0_i32_0 : i32, i32
  }
  func.func @transform_5(%arg0: i32) -> (i32, i32) {
    %c0_i32 = arith.constant 0 : i32
    %c0_i32_0 = arith.constant 0 : i32
    %c0_i32_1 = arith.constant 0 : i32
    return %c0_i32, %c0_i32_0 : i32, i32
  }
  func.func @transform_6(%arg0: i32) -> (i32, i32) {
    %c0_i32 = arith.constant 0 : i32
    %c0_i32_0 = arith.constant 0 : i32
    %c0_i32_1 = arith.constant 0 : i32
    return %c0_i32, %c0_i32_0 : i32, i32
  }
  func.func @transform_7(%arg0: i32) -> (i32, i32) {
    %c0_i32 = arith.constant 0 : i32
    %c0_i32_0 = arith.constant 0 : i32
    return %arg0, %c0_i32 : i32, i32
  }
}

</mosaic_0001>

<bundles_post_ra>
// kernel: tpu_custom_call.1
= control target key start
LH: loop header
LB: loop body
LE: loop exit
PB: predicated region body
PF: predicated region fallthrough
CT: control target
= control target key end

     0   :  { %12 = vsyncpa [#allocation3], 0  ;;  %s295_s24 = smov [#allocation2]   ;;  %s378_s0 = inlined_call_operand.vmem [shape: f32[8,2], index: 0, kind: input, shape index: {}]   ;;  %s379_s1 = inlined_call_operand.vmem [shape: f32[2,128], index: 1, kind: input, shape index: {}]   ;;  %s380_s2 = inlined_call_operand.vmem [shape: f32[1,128], index: 2, kind: input, shape index: {}]   ;;  %s381_s3 = inlined_call_operand.hbm [shape: bf16[128,128], index: 3, kind: input, shape index: {}]   ;;  %s382_s4 = inlined_call_operand.vmem [shape: f32[1,128], index: 4, kind: input, shape index: {}]   ;;  %s383_s5 = inlined_call_operand.vmem [shape: f32[1,128], index: 5, kind: input, shape index: {}]   ;;  %s384_s6 = inlined_call_operand.vmem [shape: f32[1,128], index: 6, kind: input, shape index: {}]   ;;  %s385_s7 = inlined_call_operand.vmem [shape: f32[8,1], index: 7, kind: output, shape index: {}]  }
   0x1   :  { %s24_s25 = sshll.u32 %s295_s24, 4  ;;  %s271_s28 = scalar_lea.hbm %s381_s3, 1024  ;;  %s25_s25 = int_to_ptr.vmem [resolvable:$true] %s24_s25 }
   0x2   :  { %p272_p0 = scmp.ne.s32.totalorder %s381_s3, %s271_s28  ;;  %p275_p1 = scmp.lt.u32.totalorder %s271_s28, %s381_s3 }
   0x4   :  { %p277_p2 = pnand %p275_p1, %p272_p0 }
   0x6   :  { %280 = shalt.err (!%p277_p2)
}
   0x7   :  { %s281_s10 = scalar_lea.vmem %s25_s25, 1024  ;;  %p286_p4 = scmp.lt.s32.totalorder %s25_s25, %s25_s25 }
   0x8   :  { %p282_p3 = scmp.ne.s32.totalorder %s25_s25, %s281_s10  ;;  %p287_p5 = scmp.lt.s32.totalorder %s281_s10, %s281_s10 }
   0xa   :  { %p288_p6 = por %p287_p5, %p286_p4 }
   0xc   :  { %p289_p7 = pnand %p288_p6, %p282_p3 }
   0xe   :  { %292 = shalt.err (!%p289_p7)
}
   0xf   :  { %s296_s11 = smov 64   ;;  %s297_s12 = smov 4  }
  0x10   :  { %30 = dma.hbm_to_vmem [thread:$0]  %s381_s3, 1024, %s25_s25, [#allocation3], %s296_s11, %s296_s11, %s297_s12  }
  0x11   :  { %293 = dma.done.wait [#allocation3], 1024  }
  0x12   :  { %294 = vsyncadd [#allocation3], 4294966272  ;;  %v298_v0 = vmov 0   ;;  %v299_v1 = vmov 0.0   ;;  %v41_v2 = vld [vmem:[%s378_s0] sm:$0xff]  ;;  %v264_v4 = vld [vmem:[#allocation2 + $0x8] sm:$0xff]  }
  0x13   :  { %261 = vset.pattern.permute.xlu0 %v298_v0  ;;  %234 = vmatprep.subr.bf16.mxu0 %v299_v1  ;;  %v263_v3 = vld [vmem:[#allocation2] sm:$0xff]   ;;  %v300_v5 = vmov 1   ;;  %v265_v6 = vld [vmem:[#allocation2 + $0x10] sm:$0xff]   ;;  %v266_v7 = vld [vmem:[#allocation2 + $0x18] sm:$0xff]   ;;  %vm301_vm0 = vmmov 0   ;;  %vm204_vm1 = vcmask 7168  }
  0x14   :  { %45 = vperm.xlu0 %261, %v41_v2   ;;  %235 = vmatpush3.bf16.msra.mxu0 %v263_v3  ;;  %v267_v8 = vld [vmem:[#allocation2 + $0x20] sm:$0xff]   ;;  %v268_v9 = vld [vmem:[#allocation2 + $0x28] sm:$0xff]   ;;  %v269_v10 = vld [vmem:[#allocation2 + $0x30] sm:$0xff]  }
  0x15   :  { %236 = vmatprep.subr.bf16.mxu0 %v299_v1  ;;  %250 = vmatprep.mubr.msk.bf16.mxu0 %vm301_vm0, %v299_v1  ;;  %v270_v11 = vld [vmem:[#allocation2 + $0x38] sm:$0xff]   ;;  %v211_v13 = vld [vmem:[%s379_s1] ss:$0 sm:$0xff]  ;;  %v212_v14 = vld [vmem:[%s379_s1 + $0x1] ss:$0 sm:$0xff] }
  0x16   :  { %v213_v18 = vld [vmem:[%s380_s2] ss:$0 sm:$0xff] }
  0x17   :  { %v214_v23 = vld [vmem:[%s382_s4] ss:$0 sm:$0xff] }
  0x18   :  { %262 = vset.pattern.permute.xlu0 %v300_v5  ;;  %237 = vmatpush3.bf16.msra.mxu0 %v264_v4  ;;  %v223_v28 = vld [vmem:[%s383_s5] ss:$0 sm:$0xff] }
  0x19   :  { %55 = vperm.xlu0 %262, %v41_v2   ;;  %238 = vmatprep.subr.bf16.mxu0 %v299_v1  ;;  %v224_v32 = vld [vmem:[%s384_s6] ss:$0 sm:$0xff] }
  0x1c   :  { %239 = vmatpush3.bf16.msra.mxu0 %v265_v6 }
  0x1d   :  { %240 = vmatprep.subr.bf16.mxu0 %v299_v1 }
  0x20   :  { %241 = vmatpush3.bf16.msra.mxu0 %v266_v7 }
  0x21   :  { %242 = vmatprep.subr.bf16.mxu0 %v299_v1 }
  0x24   :  { %243 = vmatpush3.bf16.msra.mxu0 %v267_v8 }
  0x25   :  { %244 = vmatprep.subr.bf16.mxu0 %v299_v1 }
  0x28   :  { %245 = vmatpush3.bf16.msra.mxu0 %v268_v9 }
  0x29   :  { %246 = vmatprep.subr.bf16.mxu0 %v299_v1 }
  0x2c   :  { %247 = vmatpush3.bf16.msra.mxu0 %v269_v10 }
  0x2d   :  { %248 = vmatprep.subr.bf16.mxu0 %v299_v1 }
  0x30   :  { %249 = vmatpush3.bf16.msra.mxu0 %v270_v11 }
  0x93   :  { %v46_v12 = vpop.permute.xlu0 %45 }
  0x94   :  { %v52_v16 = vmul.f32 %v211_v13, %v46_v12 }
  0x98   :  { %v56_v15 = vpop.permute.xlu0 %55 }
  0x99   :  { %v62_v17 = vmul.f32 %v212_v14, %v56_v15 }
  0x9b   :  { %v63_v19 = vadd.f32 %v62_v17, %v52_v16 }
  0x9d   :  { %v71_v20 = vadd.f32 %v213_v18, %v63_v19 }
  0x9f   :  { %v72_v21 = vmax.f32 %v71_v20, 0.0 }
  0xa1   :  { %v73_v22 = vpack.c.bf16 %v72_v21, %v72_v21 }
  0xa3   :  { %251 = vmatmul.mubr.bf16.vlgmr.msra.gmra.mrb[0].mxu0 %v73_v22 }
 0x176   :  { %v179_v24 = vpop.f32.mrb[0].mxu0 }
 0x177   :  { %v180_v25 = vadd.f32 %v214_v23, %v179_v24  ;;  %v252_v26 = vpop.f32.mrb[1].mxu0 }
 0x178   :  { %v182_v27 = vpop.f32.mrb[2].mxu0 }
 0x179   :  { %v185_v29 = vmax.f32 %v180_v25, 0.0  ;;  %v253_v30 = vpop.f32.mrb[3].mxu0 }
 0x17b   :  { %v193_v31 = vmul.f32 %v223_v28, %v185_v29 }
 0x17d   :  { %194 = vadd.xlane.f32.xlu1 %v193_v31 }
 0x20a   :  { %v195_v33 = vpop.xlane.xlu1 %194 }
 0x20b   :  { %v203_v34 = vadd.f32 %v224_v32, %v195_v33 }
 0x20d   :  { %205 = vst.msk [vmem:[%s385_s7] sm:$0xff] %vm204_vm1, %v203_v34 }
 0x20e   :  { %210 = vsyncpa [#allocation3], 1 }

</bundles_post_ra>
